<compile_context>
chip_gen: v6e
topology: v6e:2x2x1
jax: 0.10.0
libtpu: 0.0.40
codegen_flags: <defaults>
</compile_context>

<pallas_src>
import math
import functools

import jax
import jax.numpy as jnp
from jax import lax
from jax.experimental import pallas as pl
from jax.experimental.pallas import tpu as pltpu


def _palm_attention_kernel(
    x_ref,        # (1, S, H)   f32 hidden states for this batch element
    mask_ref,     # (1, 1, S)   f32 additive attention mask
    wqkv_ref,     # (H, 3H)     bf16 fused QKV weight
    bqkv_ref,     # (1, 3H)     f32 fused QKV bias
    wd_ref,       # (H, H)      bf16 output dense weight
    bd_ref,       # (1, H)      f32 output dense bias
    gamma_ref,    # (1, H)      f32 LayerNorm gamma
    beta_ref,     # (1, H)      f32 LayerNorm beta
    out_ref,      # (1, TQ, H)  output tile
    qh_ref,       # (NH, S, hd) bf16 scratch: scaled query heads (whole seq)
    kh_ref,       # (NH, S, hd) bf16 scratch: key heads
    vh_ref,       # (NH, S, hd) bf16 scratch: value heads
    *,
    num_heads: int,
    head_size: int,
    eps: float,
):
    S, H = x_ref.shape[1], x_ref.shape[2]
    TQ = out_ref.shape[1]
    qi = pl.program_id(1)
    scale = 1.0 / math.sqrt(head_size)

    # --- once per batch element: fused QKV projection over the full sequence,
    #     stored head-major in persistent VMEM scratch (re-used by all q tiles).
    @pl.when(qi == 0)
    def _project_qkv():
        x_bf = x_ref[0].astype(jnp.bfloat16)                              # [S, H]
        qkv = jnp.dot(x_bf, wqkv_ref[...],
                      preferred_element_type=jnp.float32) + bqkv_ref[...]  # [S, 3H] f32

        def to_heads(t_bf):                                               # [S,H]->[NH,S,hd]
            return jnp.swapaxes(t_bf.reshape(S, num_heads, head_size), 0, 1)

        # Fold 1/sqrt(hd) into q in f32 *before* the bf16 cast.
        qh_ref[...] = to_heads((qkv[:, 0:H] * scale).astype(jnp.bfloat16))
        kh_ref[...] = to_heads(qkv[:, H:2 * H].astype(jnp.bfloat16))
        vh_ref[...] = to_heads(qkv[:, 2 * H:3 * H].astype(jnp.bfloat16))

    # --- per q tile: attention + output dense + residual + LayerNorm.
    q_start = pl.multiple_of(qi * TQ, TQ)
    qh = qh_ref[:, pl.ds(q_start, TQ), :]                                 # [NH, TQ, hd] bf16

    # Batched scores (contraction over hd; q already carries the 1/sqrt(hd)).
    scores = jnp.einsum("hqd,hkd->hqk", qh, kh_ref[...],
                        preferred_element_type=jnp.float32)               # [NH, TQ, S] f32
    scores = scores + mask_ref[0][None]                                   # [1,1,S] broadcast

    # Numerically-stable softmax over keys, f32 stats, EUP reciprocal.
    scores = scores - jnp.max(scores, axis=-1, keepdims=True)
    p = jnp.exp(scores)
    p = p * pl.reciprocal(jnp.sum(p, axis=-1, keepdims=True), approx=True)

    # Context matmul and back to [TQ, H] (== permute+reshape in torch).
    ctx = jnp.einsum("hqk,hkd->hqd", p.astype(jnp.bfloat16), vh_ref[...],
                     preferred_element_type=jnp.float32)                  # [NH, TQ, hd] f32
    ctx = jnp.swapaxes(ctx.astype(jnp.bfloat16), 0, 1).reshape(TQ, H)     # [TQ, H] bf16

    attn_out = jnp.dot(ctx, wd_ref[...],
                       preferred_element_type=jnp.float32) + bd_ref[...]  # [TQ, H] f32

    x_q = x_ref[0, pl.ds(q_start, TQ), :]                                 # residual slice, f32
    y = attn_out + x_q

    # One-pass LayerNorm statistics: var = E[y^2] - E[y]^2.
    mean = jnp.mean(y, axis=-1, keepdims=True)
    var = jnp.mean(y * y, axis=-1, keepdims=True) - mean * mean
    y_norm = (y - mean) * lax.rsqrt(var + eps)
    out_ref[0] = (y_norm * gamma_ref[...] + beta_ref[...]).astype(out_ref.dtype)


def prepare_palm_attention_params(params):
    """One-time parameter fusion / casting, hoisted out of the forward call."""
    return {
        "wqkv": jnp.concatenate(
            [params["wq"], params["wk"], params["wv"]], axis=1).astype(jnp.bfloat16),
        "bqkv": jnp.concatenate(
            [params["bq"], params["bk"], params["bv"]], axis=1).astype(jnp.float32),
        "wd": params["wd"].astype(jnp.bfloat16),
        "bd": params["bd"].astype(jnp.float32),
        "ln_gamma": params["ln_gamma"].astype(jnp.float32),
        "ln_beta": params["ln_beta"].astype(jnp.float32),
    }


def palm_attention(hidden_states, attention_mask, prepared,
                   *, num_heads, eps=1e-12, q_tile=128):
    """hidden_states: [B, S, H] f32, attention_mask: [B, S] (1 = keep).

    `prepared` is the output of prepare_palm_attention_params (call once at
    model init, not per forward).
    """
    B, S, H = hidden_states.shape
    head_size = H // num_heads
    TQ = q_tile if (S % q_tile == 0) else S        # fall back to one tile
    num_q_tiles = S // TQ

    # Additive mask, [B, 1, S] (2-D mask path of the torch module).
    add_mask = ((1.0 - attention_mask.astype(jnp.float32)) * -10000.0).reshape(B, 1, S)

    kernel = functools.partial(
        _palm_attention_kernel,
        num_heads=num_heads, head_size=head_size, eps=eps)

    const = lambda shape: pl.BlockSpec(shape, lambda b, q: (0,) * len(shape))

    return pl.pallas_call(
        kernel,
        out_shape=jax.ShapeDtypeStruct((B, S, H), hidden_states.dtype),
        grid_spec=pltpu.PrefetchScalarGridSpec(
            num_scalar_prefetch=0,
            grid=(B, num_q_tiles),
            in_specs=[
                # Full-sequence hidden states; block index only changes with b,
                # so it is not re-DMA'd across q tiles of the same batch element.
                pl.BlockSpec((1, S, H), lambda b, q: (b, 0, 0)),
                pl.BlockSpec((1, 1, S), lambda b, q: (b, 0, 0)),   # additive mask
                const((H, 3 * H)), const((1, 3 * H)),              # fused Wqkv, bqkv
                const((H, H)), const((1, H)),                      # Wdense, bdense
                const((1, H)), const((1, H)),                      # LN gamma, beta
            ],
            out_specs=pl.BlockSpec((1, TQ, H), lambda b, q: (b, q, 0)),
            scratch_shapes=[
                pltpu.VMEM((num_heads, S, head_size), jnp.bfloat16),  # q heads (scaled)
                pltpu.VMEM((num_heads, S, head_size), jnp.bfloat16),  # k heads
                pltpu.VMEM((num_heads, S, head_size), jnp.bfloat16),  # v heads
            ],
        ),
        compiler_params=pltpu.CompilerParams(
            dimension_semantics=("parallel", "arbitrary"),
            vmem_limit_bytes=48 * 1024 * 1024),
    )(
        hidden_states, add_mask,
        prepared["wqkv"], prepared["bqkv"],
        prepared["wd"], prepared["bd"],
        prepared["ln_gamma"], prepared["ln_beta"],
    )


def _reference(hidden_states, attention_mask, params, *, num_heads, eps=1e-12):
    """Pure-JAX f32 reference replicating the torch forward (eval mode)."""
    B, S, H = hidden_states.shape
    hd = H // num_heads
    x = hidden_states

    def proj(w, b):
        return (x @ w + b).reshape(B, S, num_heads, hd).transpose(0, 2, 1, 3)

    q = proj(params["wq"], params["bq"])
    k = proj(params["wk"], params["bk"])
    v = proj(params["wv"], params["bv"])

    scores = jnp.einsum("bhqd,bhkd->bhqk", q, k) / math.sqrt(hd)
    add_mask = ((1.0 - attention_mask.astype(jnp.float32)) * -10000.0)[:, None, None, :]
    scores = scores + add_mask
    probs = jax.nn.softmax(scores, axis=-1)
    ctx = jnp.einsum("bhqk,bhkd->bhqd", probs, v)
    ctx = ctx.transpose(0, 2, 1, 3).reshape(B, S, H)
    out = ctx @ params["wd"] + params["bd"]
    y = out + x
    mean = jnp.mean(y, axis=-1, keepdims=True)
    var = jnp.mean((y - mean) ** 2, axis=-1, keepdims=True)
    return (y - mean) / jnp.sqrt(var + eps) * params["ln_gamma"] + params["ln_beta"]


if __name__ == "__main__":
    # Small config: batch=2, seq=8, hidden=32, heads=4 -> head_size=8.
    B, S, H, NH = 2, 8, 32, 4
    key = jax.random.PRNGKey(0)
    ks = jax.random.split(key, 8)

    scale = 1.0 / math.sqrt(H)
    params = {
        "wq": jax.random.normal(ks[0], (H, H), jnp.float32) * scale,  # [in, out]
        "bq": jax.random.normal(ks[1], (1, H), jnp.float32) * 0.02,
        "wk": jax.random.normal(ks[2], (H, H), jnp.float32) * scale,
        "bk": jax.random.normal(ks[3], (1, H), jnp.float32) * 0.02,
        "wv": jax.random.normal(ks[4], (H, H), jnp.float32) * scale,
        "bv": jax.random.normal(ks[5], (1, H), jnp.float32) * 0.02,
        "wd": jax.random.normal(ks[6], (H, H), jnp.float32) * scale,
        "bd": jnp.zeros((1, H), jnp.float32),
        "ln_gamma": jnp.ones((1, H), jnp.float32),
        "ln_beta": jnp.zeros((1, H), jnp.float32),
    }

    hidden_states = jax.random.normal(ks[7], (B, S, H), jnp.float32)
    # mask: keep first 6 tokens of batch 0, all 8 of batch 1.
    attention_mask = jnp.array(
        [[1, 1, 1, 1, 1, 1, 0, 0],
         [1, 1, 1, 1, 1, 1, 1, 1]], dtype=jnp.float32)

    prepared = prepare_palm_attention_params(params)   # one-time init work
    out = palm_attention(hidden_states, attention_mask, prepared, num_heads=NH)
    out = jax.block_until_ready(out)

    ref = _reference(hidden_states, attention_mask, params, num_heads=NH)
    assert out.shape == (B, S, H)
    # bf16 MXU operands + approx reciprocal -> loosened tolerance vs f32 reference.
    assert jnp.allclose(out, ref, atol=5e-2, rtol=5e-2), "mismatch vs JAX reference"

    print("KERNEL_OK")
</pallas_src>

<mosaic_0001>
module attributes {stable_mosaic.version = 11 : i64} {
  func.func @_palm_attention_kernel(%arg0: i32, %arg1: i32, %arg2: memref<1x8x32xf32, #tpu.memory_space<vmem>>, %arg3: memref<1x1x8xf32, #tpu.memory_space<vmem>>, %arg4: memref<32x96xbf16, #tpu.memory_space<vmem>>, %arg5: memref<1x96xf32, #tpu.memory_space<vmem>>, %arg6: memref<32x32xbf16, #tpu.memory_space<vmem>>, %arg7: memref<1x32xf32, #tpu.memory_space<vmem>>, %arg8: memref<1x32xf32, #tpu.memory_space<vmem>>, %arg9: memref<1x32xf32, #tpu.memory_space<vmem>>, %arg10: memref<1x8x32xf32, #tpu.memory_space<vmem>>, %arg11: memref<4x8x8xbf16, #tpu.memory_space<vmem>>, %arg12: memref<4x8x8xbf16, #tpu.memory_space<vmem>>, %arg13: memref<4x8x8xbf16, #tpu.memory_space<vmem>>) attributes {dimension_semantics = [#tpu.dimension_semantics<parallel>, #tpu.dimension_semantics<arbitrary>], iteration_bounds = array<i64: 2, 1>, scalar_prefetch = 0 : i64, scratch_operands = 3 : i64, tpu.core_type = #tpu.core_type<tc>, window_params = [{transform_indices = @transform_0, window_bounds = array<i64: 1, 8, 32>}, {transform_indices = @transform_1, window_bounds = array<i64: 1, 1, 8>}, {pipeline_mode = #tpu.pipeline_mode<synchronous>, transform_indices = @transform_2, window_bounds = array<i64: 32, 96>}, {pipeline_mode = #tpu.pipeline_mode<synchronous>, transform_indices = @transform_3, window_bounds = array<i64: 1, 96>}, {pipeline_mode = #tpu.pipeline_mode<synchronous>, transform_indices = @transform_4, window_bounds = array<i64: 32, 32>}, {pipeline_mode = #tpu.pipeline_mode<synchronous>, transform_indices = @transform_5, window_bounds = array<i64: 1, 32>}, {pipeline_mode = #tpu.pipeline_mode<synchronous>, transform_indices = @transform_6, window_bounds = array<i64: 1, 32>}, {pipeline_mode = #tpu.pipeline_mode<synchronous>, transform_indices = @transform_7, window_bounds = array<i64: 1, 32>}, {transform_indices = @transform_8, window_bounds = array<i64: 1, 8, 32>}]} {
    %c0_i32 = arith.constant 0 : i32
    %0 = arith.cmpi eq, %arg1, %c0_i32 : i32
    %1 = arith.extui %0 : i1 to i32
    %c0_i32_0 = arith.constant 0 : i32
    %2 = arith.cmpi ne, %1, %c0_i32_0 : i32
    scf.if %2 {
      %c0_33 = arith.constant 0 : index
      %c0_34 = arith.constant 0 : index
      %c0_35 = arith.constant 0 : index
      %66 = vector.load %arg2[%c0_33, %c0_34, %c0_35] : memref<1x8x32xf32, #tpu.memory_space<vmem>>, vector<1x8x32xf32>
      %67 = vector.shape_cast %66 : vector<1x8x32xf32> to vector<8x32xf32>
      %68 = arith.truncf %67 : vector<8x32xf32> to vector<8x32xbf16>
      %c0_36 = arith.constant 0 : index
      %c0_37 = arith.constant 0 : index
      %69 = vector.load %arg4[%c0_36, %c0_37] : memref<32x96xbf16, #tpu.memory_space<vmem>>, vector<32x96xbf16>
      %cst_38 = arith.constant dense<0.000000e+00> : vector<8x96xf32>
      %70 = tpu.matmul %68, %69, %cst_38 {dimension_numbers = #tpu.dot_dimension_numbers<[1], [0], [0], [1], [0, 0, 1, 1], [], []>} : vector<8x32xbf16>, vector<32x96xbf16>, vector<8x96xf32> -> vector<8x96xf32>
      %c0_39 = arith.constant 0 : index
      %c0_40 = arith.constant 0 : index
      %71 = vector.load %arg5[%c0_39, %c0_40] : memref<1x96xf32, #tpu.memory_space<vmem>>, vector<1x96xf32>
      %72 = vector.broadcast %71 : vector<1x96xf32> to vector<8x96xf32>
      %73 = arith.addf %70, %72 : vector<8x96xf32>
      %74 = vector.extract_strided_slice %73 {offsets = [0, 0], sizes = [8, 32], strides = [1, 1]} : vector<8x96xf32> to vector<8x32xf32>
      %cst_41 = arith.constant 0.353553385 : f32
      %75 = vector.broadcast %cst_41 : f32 to vector<8x32xf32>
      %76 = arith.mulf %74, %75 : vector<8x32xf32>
      %77 = arith.truncf %76 : vector<8x32xf32> to vector<8x32xbf16>
      %78 = vector.shape_cast %77 : vector<8x32xbf16> to vector<8x4x8xbf16>
      %79 = tpu.transpose %78, [1, 0, 2] : vector<8x4x8xbf16> -> vector<4x8x8xbf16>
      %c0_42 = arith.constant 0 : index
      %c0_43 = arith.constant 0 : index
      %c0_44 = arith.constant 0 : index
      %80 = vector.load %arg11[%c0_42, %c0_43, %c0_44] : memref<4x8x8xbf16, #tpu.memory_space<vmem>>, vector<4x8x8xbf16>
      tpu.vector_store %arg11[%c0_42, %c0_43, %c0_44], %79 {strides = array<i32>} : memref<4x8x8xbf16, #tpu.memory_space<vmem>>, vector<4x8x8xbf16>,
      %81 = vector.extract_strided_slice %73 {offsets = [0, 32], sizes = [8, 32], strides = [1, 1]} : vector<8x96xf32> to vector<8x32xf32>
      %82 = arith.truncf %81 : vector<8x32xf32> to vector<8x32xbf16>
      %83 = vector.shape_cast %82 : vector<8x32xbf16> to vector<8x4x8xbf16>
      %84 = tpu.transpose %83, [1, 0, 2] : vector<8x4x8xbf16> -> vector<4x8x8xbf16>
      %c0_45 = arith.constant 0 : index
      %c0_46 = arith.constant 0 : index
      %c0_47 = arith.constant 0 : index
      %85 = vector.load %arg12[%c0_45, %c0_46, %c0_47] : memref<4x8x8xbf16, #tpu.memory_space<vmem>>, vector<4x8x8xbf16>
      tpu.vector_store %arg12[%c0_45, %c0_46, %c0_47], %84 {strides = array<i32>} : memref<4x8x8xbf16, #tpu.memory_space<vmem>>, vector<4x8x8xbf16>,
      %86 = vector.extract_strided_slice %73 {offsets = [0, 64], sizes = [8, 32], strides = [1, 1]} : vector<8x96xf32> to vector<8x32xf32>
      %87 = arith.truncf %86 : vector<8x32xf32> to vector<8x32xbf16>
      %88 = vector.shape_cast %87 : vector<8x32xbf16> to vector<8x4x8xbf16>
      %89 = tpu.transpose %88, [1, 0, 2] : vector<8x4x8xbf16> -> vector<4x8x8xbf16>
      %c0_48 = arith.constant 0 : index
      %c0_49 = arith.constant 0 : index
      %c0_50 = arith.constant 0 : index
      %90 = vector.load %arg13[%c0_48, %c0_49, %c0_50] : memref<4x8x8xbf16, #tpu.memory_space<vmem>>, vector<4x8x8xbf16>
      tpu.vector_store %arg13[%c0_48, %c0_49, %c0_50], %89 {strides = array<i32>} : memref<4x8x8xbf16, #tpu.memory_space<vmem>>, vector<4x8x8xbf16>,
    } else {
    }
    %c8_i32 = arith.constant 8 : i32
    %3 = arith.muli %arg1, %c8_i32 : i32
    %4 = tpu.assume_multiple %3, 8 : i32
    %c0 = arith.constant 0 : index
    %5 = arith.index_cast %4 : i32 to index
    %c0_1 = arith.constant 0 : index
    %6 = vector.load %arg11[%c0, %5, %c0_1] : memref<4x8x8xbf16, #tpu.memory_space<vmem>>, vector<4x8x8xbf16>
    %c0_2 = arith.constant 0 : index
    %c0_3 = arith.constant 0 : index
    %c0_4 = arith.constant 0 : index
    %7 = vector.load %arg12[%c0_2, %c0_3, %c0_4] : memref<4x8x8xbf16, #tpu.memory_space<vmem>>, vector<4x8x8xbf16>
    "tpu.trace_start"() <{level = 10 : i32, message = "hqd,hkd->hqk"}> : () -> ()
    %cst = arith.constant dense<0.000000e+00> : vector<4x8x8xf32>
    %8 = tpu.matmul %6, %7, %cst {dimension_numbers = #tpu.dot_dimension_numbers<[2], [2], [1], [1], [0, 0, 0, 1, 1, 1], [0], [0]>} : vector<4x8x8xbf16>, vector<4x8x8xbf16>, vector<4x8x8xf32> -> vector<4x8x8xf32>
    "tpu.trace_stop"() : () -> ()
    %c0_5 = arith.constant 0 : index
    %c0_6 = arith.constant 0 : index
    %c0_7 = arith.constant 0 : index
    %9 = vector.load %arg3[%c0_5, %c0_6, %c0_7] : memref<1x1x8xf32, #tpu.memory_space<vmem>>, vector<1x1x8xf32>
    %10 = vector.shape_cast %9 : vector<1x1x8xf32> to vector<1x8xf32>
    %11 = vector.shape_cast %10 : vector<1x8xf32> to vector<1x1x8xf32>
    %12 = vector.broadcast %11 : vector<1x1x8xf32> to vector<4x8x8xf32>
    %13 = arith.addf %8, %12 : vector<4x8x8xf32>
    %cst_8 = arith.constant dense<0xFF800000> : vector<4x8xf32>
    %14 = vector.multi_reduction <maximumf>, %13, %cst_8 [2] : vector<4x8x8xf32> to vector<4x8xf32>
    %15 = vector.shape_cast %14 : vector<4x8xf32> to vector<4x8x1xf32>
    %16 = vector.broadcast %15 : vector<4x8x1xf32> to vector<4x8x8xf32>
    %17 = arith.subf %13, %16 : vector<4x8x8xf32>
    %18 = math.exp %17 : vector<4x8x8xf32>
    %cst_9 = arith.constant dense<0.000000e+00> : vector<4x8xf32>
    %19 = vector.multi_reduction <add>, %18, %cst_9 [2] : vector<4x8x8xf32> to vector<4x8xf32>
    %20 = vector.shape_cast %19 : vector<4x8xf32> to vector<4x8x1xf32>
    %21 = tpu.reciprocal %20 {approx = true} : vector<4x8x1xf32> -> vector<4x8x1xf32>
    %22 = vector.broadcast %21 : vector<4x8x1xf32> to vector<4x8x8xf32>
    %23 = arith.mulf %18, %22 : vector<4x8x8xf32>
    %24 = arith.truncf %23 : vector<4x8x8xf32> to vector<4x8x8xbf16>
    %c0_10 = arith.constant 0 : index
    %c0_11 = arith.constant 0 : index
    %c0_12 = arith.constant 0 : index
    %25 = vector.load %arg13[%c0_10, %c0_11, %c0_12] : memref<4x8x8xbf16, #tpu.memory_space<vmem>>, vector<4x8x8xbf16>
    "tpu.trace_start"() <{level = 10 : i32, message = "hqk,hkd->hqd"}> : () -> ()
    %cst_13 = arith.constant dense<0.000000e+00> : vector<4x8x8xf32>
    %26 = tpu.matmul %24, %25, %cst_13 {dimension_numbers = #tpu.dot_dimension_numbers<[2], [1], [1], [2], [0, 0, 0, 1, 1, 2], [0], [0]>} : vector<4x8x8xbf16>, vector<4x8x8xbf16>, vector<4x8x8xf32> -> vector<4x8x8xf32>
    "tpu.trace_stop"() : () -> ()
    %27 = arith.truncf %26 : vector<4x8x8xf32> to vector<4x8x8xbf16>
    %28 = tpu.transpose %27, [1, 0, 2] : vector<4x8x8xbf16> -> vector<8x4x8xbf16>
    %29 = vector.shape_cast %28 : vector<8x4x8xbf16> to vector<8x32xbf16>
    %c0_14 = arith.constant 0 : index
    %c0_15 = arith.constant 0 : index
    %30 = vector.load %arg6[%c0_14, %c0_15] : memref<32x32xbf16, #tpu.memory_space<vmem>>, vector<32x32xbf16>
    %cst_16 = arith.constant dense<0.000000e+00> : vector<8x32xf32>
    %31 = tpu.matmul %29, %30, %cst_16 {dimension_numbers = #tpu.dot_dimension_numbers<[1], [0], [0], [1], [0, 0, 1, 1], [], []>} : vector<8x32xbf16>, vector<32x32xbf16>, vector<8x32xf32> -> vector<8x32xf32>
    %c0_17 = arith.constant 0 : index
    %c0_18 = arith.constant 0 : index
    %32 = vector.load %arg7[%c0_17, %c0_18] : memref<1x32xf32, #tpu.memory_space<vmem>>, vector<1x32xf32>
    %33 = vector.broadcast %32 : vector<1x32xf32> to vector<8x32xf32>
    %34 = arith.addf %31, %33 : vector<8x32xf32>
    %c0_19 = arith.constant 0 : index
    %35 = arith.index_cast %4 : i32 to index
    %c0_20 = arith.constant 0 : index
    %36 = vector.load %arg2[%c0_19, %35, %c0_20] : memref<1x8x32xf32, #tpu.memory_space<vmem>>, vector<1x8x32xf32>
    %37 = vector.shape_cast %36 : vector<1x8x32xf32> to vector<8x32xf32>
    %38 = arith.addf %34, %37 : vector<8x32xf32>
    %cst_21 = arith.constant dense<0.000000e+00> : vector<8xf32>
    %39 = vector.multi_reduction <add>, %38, %cst_21 [1] : vector<8x32xf32> to vector<8xf32>
    %40 = vector.shape_cast %39 : vector<8xf32> to vector<8x1xf32>
    %cst_22 = arith.constant 3.200000e+01 : f32
    %41 = vector.broadcast %cst_22 : f32 to vector<8x1xf32>
    %42 = arith.divf %40, %41 : vector<8x1xf32>
    %43 = arith.mulf %38, %38 : vector<8x32xf32>
    %cst_23 = arith.constant dense<0.000000e+00> : vector<8xf32>
    %44 = vector.multi_reduction <add>, %43, %cst_23 [1] : vector<8x32xf32> to vector<8xf32>
    %45 = vector.shape_cast %44 : vector<8xf32> to vector<8x1xf32>
    %cst_24 = arith.constant 3.200000e+01 : f32
    %46 = vector.broadcast %cst_24 : f32 to vector<8x1xf32>
    %47 = arith.divf %45, %46 : vector<8x1xf32>
    %48 = arith.mulf %42, %42 : vector<8x1xf32>
    %49 = arith.subf %47, %48 : vector<8x1xf32>
    %50 = vector.broadcast %42 : vector<8x1xf32> to vector<8x32xf32>
    %51 = arith.subf %38, %50 : vector<8x32xf32>
    %cst_25 = arith.constant 9.99999996E-13 : f32
    %52 = vector.broadcast %cst_25 : f32 to vector<8x1xf32>
    %53 = arith.addf %49, %52 : vector<8x1xf32>
    %54 = math.rsqrt %53 : vector<8x1xf32>
    %55 = vector.broadcast %54 : vector<8x1xf32> to vector<8x32xf32>
    %56 = arith.mulf %51, %55 : vector<8x32xf32>
    %c0_26 = arith.constant 0 : index
    %c0_27 = arith.constant 0 : index
    %57 = vector.load %arg8[%c0_26, %c0_27] : memref<1x32xf32, #tpu.memory_space<vmem>>, vector<1x32xf32>
    %58 = vector.broadcast %57 : vector<1x32xf32> to vector<8x32xf32>
    %59 = arith.mulf %56, %58 : vector<8x32xf32>
    %c0_28 = arith.constant 0 : index
    %c0_29 = arith.constant 0 : index
    %60 = vector.load %arg9[%c0_28, %c0_29] : memref<1x32xf32, #tpu.memory_space<vmem>>, vector<1x32xf32>
    %61 = vector.broadcast %60 : vector<1x32xf32> to vector<8x32xf32>
    %62 = arith.addf %59, %61 : vector<8x32xf32>
    %c0_30 = arith.constant 0 : index
    %c0_31 = arith.constant 0 : index
    %c0_32 = arith.constant 0 : index
    %63 = vector.load %arg10[%c0_30, %c0_31, %c0_32] : memref<1x8x32xf32, #tpu.memory_space<vmem>>, vector<1x8x32xf32>
    %64 = vector.shape_cast %63 : vector<1x8x32xf32> to vector<8x32xf32>
    %65 = vector.shape_cast %62 : vector<8x32xf32> to vector<1x8x32xf32>
    tpu.vector_store %arg10[%c0_30, %c0_31, %c0_32], %65 {strides = array<i32>} : memref<1x8x32xf32, #tpu.memory_space<vmem>>, vector<1x8x32xf32>,
    return
  }
  func.func @transform_0(%arg0: i32, %arg1: i32) -> (i32, i32, i32) {
    %c0_i32 = arith.constant 0 : i32
    %c0_i32_0 = arith.constant 0 : i32
    %c0_i32_1 = arith.constant 0 : i32
    return %arg0, %c0_i32, %c0_i32_0 : i32, i32, i32
  }
  func.func @transform_1(%arg0: i32, %arg1: i32) -> (i32, i32, i32) {
    %c0_i32 = arith.constant 0 : i32
    %c0_i32_0 = arith.constant 0 : i32
    %c0_i32_1 = arith.constant 0 : i32
    return %arg0, %c0_i32, %c0_i32_0 : i32, i32, i32
  }
  func.func @transform_2(%arg0: i32, %arg1: i32) -> (i32, i32) {
    %c0_i32 = arith.constant 0 : i32
    %c0_i32_0 = arith.constant 0 : i32
    %c0_i32_1 = arith.constant 0 : i32
    return %c0_i32, %c0_i32_0 : i32, i32
  }
  func.func @transform_3(%arg0: i32, %arg1: i32) -> (i32, i32) {
    %c0_i32 = arith.constant 0 : i32
    %c0_i32_0 = arith.constant 0 : i32
    %c0_i32_1 = arith.constant 0 : i32
    return %c0_i32, %c0_i32_0 : i32, i32
  }
  func.func @transform_4(%arg0: i32, %arg1: i32) -> (i32, i32) {
    %c0_i32 = arith.constant 0 : i32
    %c0_i32_0 = arith.constant 0 : i32
    %c0_i32_1 = arith.constant 0 : i32
    return %c0_i32, %c0_i32_0 : i32, i32
  }
  func.func @transform_5(%arg0: i32, %arg1: i32) -> (i32, i32) {
    %c0_i32 = arith.constant 0 : i32
    %c0_i32_0 = arith.constant 0 : i32
    %c0_i32_1 = arith.constant 0 : i32
    return %c0_i32, %c0_i32_0 : i32, i32
  }
  func.func @transform_6(%arg0: i32, %arg1: i32) -> (i32, i32) {
    %c0_i32 = arith.constant 0 : i32
    %c0_i32_0 = arith.constant 0 : i32
    %c0_i32_1 = arith.constant 0 : i32
    return %c0_i32, %c0_i32_0 : i32, i32
  }
  func.func @transform_7(%arg0: i32, %arg1: i32) -> (i32, i32) {
    %c0_i32 = arith.constant 0 : i32
    %c0_i32_0 = arith.constant 0 : i32
    %c0_i32_1 = arith.constant 0 : i32
    return %c0_i32, %c0_i32_0 : i32, i32
  }
  func.func @transform_8(%arg0: i32, %arg1: i32) -> (i32, i32, i32) {
    %c0_i32 = arith.constant 0 : i32
    %c0_i32_0 = arith.constant 0 : i32
    return %arg0, %arg1, %c0_i32 : i32, i32, i32
  }
}

</mosaic_0001>

<bundles_post_ra>
// kernel: tpu_custom_call.1
= control target key start
LH: loop header
LB: loop body
LE: loop exit
PB: predicated region body
PF: predicated region fallthrough
CT: control target
= control target key end

     0   :  { %s2802_s0 = inlined_call_operand.hbm [shape: f32[2,8,32], index: 0, kind: input, shape index: {}]   ;;  %s2803_s1 = inlined_call_operand.hbm [shape: f32[2,1,8], index: 1, kind: input, shape index: {}]   ;;  %s2804_s2 = inlined_call_operand.hbm [shape: bf16[32,96], index: 2, kind: input, shape index: {}]   ;;  %s2805_s3 = inlined_call_operand.vmem [shape: f32[1,96], index: 3, kind: input, shape index: {}]   ;;  %s2806_s4 = inlined_call_operand.hbm [shape: bf16[32,32], index: 4, kind: input, shape index: {}]   ;;  %s2807_s5 = inlined_call_operand.vmem [shape: f32[1,32], index: 5, kind: input, shape index: {}]   ;;  %s2808_s6 = inlined_call_operand.vmem [shape: f32[1,32], index: 6, kind: input, shape index: {}]   ;;  %s2809_s7 = inlined_call_operand.vmem [shape: f32[1,32], index: 7, kind: input, shape index: {}]   ;;  %s2810_s8 = inlined_call_operand.hbm [shape: f32[2,8,32], index: 8, kind: output, shape index: {}]  }
   0x1   :  { %2817 = sst [smem:[#allocation24_spill]] %s2802_s0 }
   0x2   :  { %2818 = sst [smem:[#allocation25_spill]] %s2804_s2 }
   0x3   :  { %2819 = sst [smem:[#allocation26_spill]] %s2806_s4 }
   0x4   :  { %13 = vsyncpa [#allocation6], 0 }
   0x5   :  { %15 = vsyncpa [#allocation6 + $0x1], 0 }
   0x6   :  { %16 = vsyncpa [#allocation9], 0 }
   0x7   :  { %18 = vsyncpa [#allocation9 + $0x1], 0 }
   0x8   :  { %19 = vsyncpa [#allocation12], 0 }
   0x9   :  { %20 = vsyncpa [#allocation7], 0 }
   0xa   :  { %22 = vsyncpa [#allocation7 + $0x1], 0  ;;  %s2388_s27 = smov 0   ;;  %s2390_s28 = smov 0  }
   0xb   :  { %s2392_s29 = smov 0   ;;  %s2394_s30 = smov 0  }
   0xc   :  { %s2396_s9 = smov 0   ;;  %s2398_s10 = smov 0  }
   0xd LB: > { %2820 = sst [smem:[#allocation19_spill]] %s2309_s29  ;;  %s2419_s11 = sadd.s32 4294967295, %s2321_s10   ;;  %s2321_s10 = sphi %s2398_s10, %s28_s10   ;;  %s2317_s9 = sphi %s2396_s9, %s2849_s9   ;;  %s2313_s30 = sphi %s2394_s30, %s2848_s30   ;;  %s2309_s29 = sphi %s2392_s29, %s2844_s29   ;;  %s2305_s28 = sphi %s2390_s28, %s2847_s28   ;;  %s2301_s27 = sphi %s2388_s27, %s2846_s27  }
   0xe   : > { %2821 = sst [smem:[#allocation20_spill]] %s2321_s10  ;;  %s1874_s12 = sadd.s32 4294967294, %s2321_s10  }
   0xf   : > { %p60_p0 = scmp.ne.s32.totalorder %s2305_s28, %s2301_s27  ;;  %p2811_p1 = scmp.eq.s32.totalorder %s2419_s11, 0 }
  0x10   : > { %p244_p3 = scmp.eq.s32.totalorder %s1874_s12, 1  ;;  %p1875_p5 = scmp.ge.s32.totalorder %s2321_s10, 1 }
  0x11   : > { %p2428_p4 = por %p2811_p1, %p60_p0  ;;  %p251_p7 = scmp.lt.s32.totalorder %s2321_s10, 3 }
  0x12   : > { %p2433_p6 = por %p244_p3, %p60_p0  ;;  %s2323_s16 = smov [#allocation10]  }
  0x13   : > { %p2438_p8 = pnand %p1875_p5, %p251_p7  ;;  %s263_s17 = sshll.u32 %s2323_s16, 4  ;;  %s264_s17 = int_to_ptr.vmem [resolvable:$true] %s263_s17 }
  0x14   : > { %s2823_s14 = scalar_select %p2433_p6, 1, 0 }
  0x15   : > { %p2010_p9 = pneg %p2438_p8  ;;  %s2324_s19 = smov [#allocation11]  }
  0x16   : > { %2824 = sst [smem:[#allocation21_spill]] %s2823_s14  ;;  %s279_s20 = sshll.u32 %s2324_s19, 4  ;;  %s280_s20 = int_to_ptr.vmem [resolvable:$true] %s279_s20 }
  0x17   : > { %p2447_p11 = pnand %p2010_p9, %p2811_p1  ;;  %s2132_s21 = scalar_lea.vmem %s264_s17, 256 }
  0x18   : > { %p2133_p13 = scmp.ne.s32.totalorder %s264_s17, %s2132_s21  ;;  %p2140_p5 = scmp.lt.s32.totalorder %s264_s17, %s264_s17 }
  0x19   : > { %p2123_p12 = pneg %p2447_p11  ;;  %p2141_p7 = scmp.lt.s32.totalorder %s2132_s21, %s2132_s21 }
  0x1b   : > { %p2135_p0 = pnand %p2133_p13, %p2123_p12  ;;  %p2142_p10 = por %p2141_p7, %p2140_p5 }
  0x1d   : > { %p2136_p3 = pneg %p2135_p0 }
  0x1f   : > { %p2143_p9 = pnand %p2142_p10, %p2136_p3 }
  0x21   : > { %2146 = shalt.err (!%p2143_p9)
}
  0x22   : > { %s2325_s22 = smov 64   ;;  %s2326_s23 = smov 4  }
  0x23   : > { %s2827_s2 = sld [smem:[#allocation25_spill]]  ;;  %s2158_s26 = scalar_lea.vmem %s280_s20, 256 }
  0x24   : > { %p2159_p1 = scmp.ne.s32.totalorder %s280_s20, %s2158_s26  ;;  %p2166_p2 = scmp.lt.s32.totalorder %s280_s20, %s280_s20 }
  0x25   : > { %p2167_p6 = scmp.lt.s32.totalorder %s2158_s26, %s2158_s26 }
  0x26   : > { %p2161_p13 = pnand %p2159_p1, %p2123_p12 }
  0x27   : > { %p2168_p5 = por %p2167_p6, %p2166_p2 }
  0x28   : > { %p2162_p0 = pneg %p2161_p13 }
  0x29   : > { %2013 = dma.hbm_to_vmem [thread:$0]  (!%p2447_p11), %s2827_s2, 256, %s264_s17, [#allocation9], %s2325_s22, %s2325_s22, %s2326_s23  }
  0x2a   : > { %p2169_p10 = pnand %p2168_p5, %p2162_p0 }
  0x2c   : > { %2172 = shalt.err (!%p2169_p10)
}
  0x2d   : > { %s2828_s4 = sld [smem:[#allocation26_spill]]  ;;  %s40_s17 = sadd.s32 1, %s2317_s9 }
  0x2e   : > { %s47_s19 = sadd.s32 1, %s2309_s29  ;;  %p42_p1 = scmp.ge.s32.totalorder %s40_s17, 2 }
  0x2f   : > { %p54_p2 = scmp.ne.s32.totalorder %s2309_s29, %s2305_s28  ;;  %p55_p6 = scmp.eq.s32.totalorder %s2321_s10, 0 }
  0x30   : > { %p2030_p12 = scmp.lt.s32.totalorder %s2321_s10, 2  ;;  %s2851_s17 = smov (%p42_p1, %s40_s17), 0 }
  0x31   : > { %2829 = sst [smem:[#allocation22_spill]] %s2851_s17  ;;  %p56_p3 = por %p55_p6, %p54_p2 }
  0x32   : > { %p2830_p7 = scmp.eq.s32.totalorder %s2419_s11, 1  ;;  %s44_s21 = ssub.s32 %s2317_s9, %s2851_s17 }
  0x33   : > { %2016 = dma.hbm_to_vmem [thread:$0]  (!%p2447_p11), %s2828_s4, 256, %s280_s20, [#allocation12], %s2325_s22, %s2325_s22, %s2326_s23  }
  0x34   : > { %p2479_p9 = por %p2830_p7, %p54_p2  ;;  %s2486_s24 = sand.u32 1, %s2309_s29  }
  0x35   : > { %p45_p11 = scmp.eq.s32.totalorder %s44_s21, 0  ;;  %s1879_s20 = sshll.u32 %s2486_s24, 3 }
  0x36   : > { %s1880_s22 = sshll.u32 %s2317_s9, 7  ;;  %s2833_s0 = sld [smem:[#allocation24_spill]] }
  0x37   : > { %s2491_s23 = scalar_select %p45_p11, %s2309_s29, %s47_s19  }
  0x38   : > { %s306_s16 = scalar_lea.vmem [#allocation5], %s1879_s20  ;;  %p2498_p13 = pnand %p2030_p12, %p56_p3 }
  0x39   : > { %2832 = sst [smem:[#allocation23_spill]] %s2491_s23  ;;  %s313_s2 = sshll.u32 %s306_s16, 4  ;;  %s314_s2 = int_to_ptr.vmem [resolvable:$true] %s313_s2 }
  0x3a   : > { %s320_s17 = sand.u32 1, %s2321_s10   ;;  %s303_s21 = scalar_lea.sflag [#allocation6], %s2486_s24 }
  0x3b   : > { %p2175_p0 = pneg %p2498_p13  ;;  %s2186_s19 = scalar_lea.vmem %s314_s2, 128 }
  0x3c   : > { %s311_s12 = scalar_lea.hbm %s2833_s0, %s1880_s22  ;;  %p2187_p5 = scmp.ne.s32.totalorder %s314_s2, %s2186_s19 }
  0x3d   : > { %s2327_s20 = smov [#allocation5]  }
  0x3e   : > { %p2189_p10 = pnand %p2187_p5, %p2175_p0  ;;  %s2191_s22 = sshll.u32 %s2327_s20, 4  ;;  %s2192_s22 = int_to_ptr.vmem [resolvable:$false] %s2191_s22 }
  0x3f   : > { %s2193_s25 = scalar_lea.vmem %s2192_s22, 256  ;;  %p2194_p2 = scmp.lt.s32.totalorder %s314_s2, %s2192_s22 }
  0x40   : > { %p2190_p1 = pneg %p2189_p10  ;;  %p2195_p6 = scmp.lt.s32.totalorder %s2193_s25, %s2186_s19 }
  0x42   : > { %p2196_p12 = por %p2195_p6, %p2194_p2 }
  0x44   : > { %p2197_p3 = pnand %p2196_p12, %p2190_p1 }
  0x46   : > { %2200 = shalt.err (!%p2197_p3)
}
  0x47   : > { %2020 = dma.hbm_to_vmem [thread:$0]  (!%p2498_p13), %s311_s12, 128, %s314_s2, %s303_s21  }
  0x48   : > { %s1881_s26 = sshll.u32 %s2317_s9, 4  ;;  %s323_s29 = scalar_lea.vmem [#allocation8], %s2486_s24 }
  0x49   : > { %s328_s23 = scalar_lea.hbm %s2803_s1, %s1881_s26  ;;  %s330_s20 = sshll.u32 %s323_s29, 4  ;;  %s331_s20 = int_to_ptr.vmem [resolvable:$true] %s330_s20 }
  0x4a   : > { %s321_s10 = scalar_lea.sflag [#allocation9], %s320_s17  ;;  %s2214_s22 = scalar_lea.vmem %s331_s20, 16 }
  0x4b   : > { %p2215_p7 = scmp.ne.s32.totalorder %s331_s20, %s2214_s22  ;;  %s2328_s19 = smov [#allocation8]  }
  0x4c   : > { %s2219_s25 = sshll.u32 %s2328_s19, 4  ;;  %s2220_s25 = int_to_ptr.vmem [resolvable:$false] %s2219_s25 }
  0x4d   : > { %p2217_p11 = pnand %p2215_p7, %p2175_p0  ;;  %s2221_s14 = scalar_lea.vmem %s2220_s25, 32 }
  0x4e   : > { %p2222_p10 = scmp.lt.s32.totalorder %s331_s20, %s2220_s25  ;;  %p2223_p1 = scmp.lt.s32.totalorder %s2221_s14, %s2214_s22 }
  0x4f   : > { %p2218_p5 = pneg %p2217_p11 }
  0x50   : > { %p2224_p2 = por %p2223_p1, %p2222_p10 }
  0x52   : > { %p2225_p6 = pnand %p2224_p2, %p2218_p5 }
  0x54   : > { %2228 = shalt.err (!%p2225_p6)
}
  0x55   : > { %2023 = dma.hbm_to_vmem [thread:$0]  (!%p2498_p13), %s328_s23, 16, %s331_s20, %s321_s10  }
  0x56   : > { %339 = sbr.rel (%p2438_p8) target bundleno = 1823 (0x71f), region = 52  ;;  %s2524_s0 = sand.u32 (!%p2438_p8), 1, %s2305_s28  }
  0x57   : > { %s1883_s2 = sshll.u32 (!%p2438_p8), %s2524_s0, 3  ;;  %s342_s29 = scalar_lea.sflag (!%p2438_p8), [#allocation6], %s2524_s0 }
  0x58   : > { %s345_s14 = scalar_lea.vmem (!%p2438_p8), [#allocation5], %s1883_s2 }
  0x5b   : > { %2280 = dma.done.wait (%p2428_p4), %s342_s29, 128  }
  0x5c   : > { %2282 = vsyncadd (%p2428_p4), %s342_s29, 4294967168  ;;  %s350_s4 = sand.u32 1, %s2419_s11   ;;  %s353_s15 = scalar_lea.vmem [#allocation8], %s2524_s0 }
  0x5d   : > { %s351_s10 = scalar_lea.sflag [#allocation9], %s350_s4 }
  0x5e   : > { %2284 = dma.done.wait (%p2428_p4), %s351_s10, 16  }
  0x5f   : > { %2286 = vsyncadd (%p2428_p4), %s351_s10, 4294967280  ;;  %p2835_p8 = scmp.eq.s32.totalorder %s2419_s11, 0 }
  0x61   : > { %2288 = dma.done.wait (%p2835_p8), [#allocation9], 256   ;;  %p2836_p13 = pmov %p2835_p8 }
  0x62   : > { %p2837_p0 = pmov %p2835_p8 }
  0x63   : > { %2290 = vsyncadd (%p2836_p13), [#allocation9], 4294967040 }
  0x64   : > { %2292 = dma.done.wait (%p2837_p0), [#allocation12], 256   ;;  %p2838_p12 = pmov %p2837_p0 }
  0x65   : > { %v2329_v0 = vmov 0.0   ;;  %vm2330_vm0 = vmmov 0   ;;  %v2099_v1 = vld [vmem:[#allocation10 + $0x8] sm:$0xff]   ;;  %v2100_v2 = vld [vmem:[#allocation10] sm:$0xff]   ;;  %vm428_vm1 = vcmask 261120   ;;  %s2331_s17 = smov 104   ;;  %v484_v19 = vlaneseq }
  0x66   : > { %2294 = vsyncadd (%p2838_p12), [#allocation12], 4294967040  ;;  %1932 = vmatprep.subr.bf16.mxu0 %v2329_v0  ;;  %1936 = vmatprep.mubr.msk.bf16.mxu0 %vm2330_vm0, %v2329_v0  ;;  %v2554_v3 = vld [vmem:[%s345_s14] sm:$0xff]  ;;  %v1887_v5 = vld [vmem:[%s2805_s3] ss:$0 sm:$0xff]  ;;  %s2332_s24 = smov 120  }
  0x67   : > { %1940 = vmatprep.subr.bf16.mxu1 %v2329_v0  ;;  %1942 = vmatprep.mubr.msk.bf16.mxu1 %vm2330_vm0, %v2329_v0  ;;  %v404_v4 = vpack.c.bf16 %v2554_v3, %v2554_v3  ;;  %s2333_s23 = smov 96   ;;  %s2334_s12 = smov 112   ;;  %v2335_v17 = vmov 1983009808   ;;  %v2336_v20 = vmov 1934713408  }
  0x68   : > { %1933 = vmatpush3.bf16.msra.mxu0 %v2099_v1  ;;  %v482_v18 = vunpack.c.l.s4 %v2335_v17  ;;  %v499_v21 = vunpack.c.l.s4 %v2336_v20  ;;  %v485_v23 = vshrl.u32 %v484_v19, 7  ;;  %v2337_v48 = vmov 0   ;;  %s2338_s21 = smov 64   ;;  %s2339_s26 = smov 8  }
  0x69   : > { %1934 = vmatprep.subr.bf16.mxu0 %v2329_v0  ;;  %vm646_vm2 = vcmask 60416   ;;  %vm1035_vm3 = vcmask 64512   ;;  %vm1275_vm4 = vcmask 1043456   ;;  %s2340_s16 = smov 16   ;;  %s2341_s20 = smov 24   ;;  %vm1628_vm5 = vcmask 130048  }
  0x6a   : > { %v483_v22 = vunpack.c.0.s8 %v482_v18  ;;  %v500_v26 = vunpack.c.0.s8 %v499_v21  ;;  %vm1631_vm6 = vcmask 195584   ;;  %s1907_s10 = sshll.u32 %s2313_s30, 7 }
  0x6c   : > { %1935 = vmatpush3.bf16.msra.mxu0 %v2100_v2  ;;  %v2581_v27 = vsub.s32 %v483_v22, %v485_v23  ;;  %v2583_v28 = vsub.s32 %v500_v26, %v485_v23 }
  0x6d   : > { %1946 = vmatprep.subr.bf16.mxu0 %v2329_v0 }
  0x6f   : > { %1937 = vmatmul.mubr.msk.bf16.vlgmr.msra.gmra.mxu0 %vm428_vm1, %v404_v4 }
  0x70   : > { %1948 = vmatprep.mubr.msk.bf16.mxu0 %vm2330_vm0, %v2329_v0 }
 0x12f   : > { %v466_v6 = vpop.f32.mrf.mxu0 }
 0x130   : > { %v467_v7 = vadd.f32 %v1887_v5, %v466_v6 }
 0x131   : > { %v1938_v8 = vpop.f32.mrf.mxu0 }
 0x132   : > { %v2566_v9 = vpack.c.bf16 %v467_v7, %v467_v7  ;;  %v472_v13 = vmul.f32 0.35355338, %v467_v7 }
 0x133   : > { %v469_v10 = vpop.f32.mrf.mxu0 }
 0x134   : > { %657 = vrot.lane.b32.xlu1 %v2566_v9, %s2331_s17  ;;  %653 = vrot.lane.b32.xlu0 %v2566_v9, %s2332_s24  ;;  %v473_v16 = vpack.c.bf16 %v472_v13, %v472_v13 }
 0x135   : > { %v1939_v11 = vpop.f32.mrf.mxu0 }
 0x136   : > { %v487_v45 = vrot.slane %v473_v16, %v2581_v27 }
 0x138   : > { %659 = vrot.lane.b32.xlu1 %v2566_v9, %s2333_s23  ;;  %655 = vrot.lane.b32.xlu0 %v2566_v9, %s2334_s12 }
 0x1a6   : > { %v2572_v12 = vpop.permute.xlu0 %653  ;;  %v2575_v14 = vpop.permute.xlu1 %657 }
 0x1a7   : > { %661 = vrot.lane.b32.xlu0 %v2572_v12, %s2333_s23 }
 0x1aa   : > { %v2577_v15 = vpop.permute.xlu0 %655  ;;  %v660_v24 = vpop.permute.xlu1 %659 }
 0x1ab   : > { %665 = vrot.lane.b32.xlu0 %v2575_v14, %s2333_s23  ;;  %663 = vrot.lane.b32.xlu1 %v2577_v15, %s2333_s23  ;;  %v674_v31 = vrot.slane %v660_v24, %v2581_v27  ;;  %s1737_s23 = scalar_lea.sflag [#allocation7], %s2524_s0 }
 0x1af   : > { %477 = vrot.lane.b32.xlu0 %v473_v16, %s2334_s12  ;;  %475 = vrot.lane.b32.xlu1 %v473_v16, %s2332_s24  ;;  %s1749_s24 = scalar_lea.hbm %s2810_s8, %s1907_s10 }
 0x1b3   : > { %479 = vrot.lane.b32.xlu1 %v473_v16, %s2331_s17 }
 0x219   : > { %v662_v25 = vpop.permute.xlu0 %661 }
 0x21a   : > { %v708_v32 = vrot.slane %v662_v25, %v2581_v27 }
 0x21d   : > { %v664_v29 = vpop.permute.xlu1 %663  ;;  %v666_v30 = vpop.permute.xlu0 %665 }
 0x21e   : > { %v682_v33 = vrot.slane %v664_v29, %v2581_v27  ;;  %v716_v34 = vrot.slane %v666_v30, %v2581_v27 }
 0x220   : > { %v683_v35 = vcombine.low %v674_v31, %v682_v33  ;;  %v684_v36 = vcombine.high %v674_v31, %v682_v33  ;;  %v717_v37 = vcombine.low %v708_v32, %v716_v34  ;;  %v718_v38 = vcombine.high %v708_v32, %v716_v34 }
 0x221   : > { %v478_v39 = vpop.permute.xlu0 %477  ;;  %v476_v40 = vpop.permute.xlu1 %475 }
 0x222   : > { %v691_v41 = vrot.slane %v683_v35, %v2583_v28  ;;  %v698_v42 = vrot.slane %v684_v36, %v2583_v28  ;;  %v725_v43 = vrot.slane %v717_v37, %v2583_v28  ;;  %v732_v44 = vrot.slane %v718_v38, %v2583_v28 }
 0x223   : > { %v495_v46 = vrot.slane %v478_v39, %v2581_v27  ;;  %v521_v47 = vrot.slane %v476_v40, %v2581_v27 }
 0x224   : > { %v699_v49 = vcombine.high %v691_v41, %v2337_v48  ;;  %v700_v50 = vcombine.high %v698_v42, %v2337_v48  ;;  %v739_v51 = vshrl.u32 %v691_v41, 16  ;;  %v755_v52 = vshrl.u32 %v698_v42, 16 }
 0x225   : > { %v733_v53 = vcombine.high %v725_v43, %v2337_v48  ;;  %v734_v54 = vcombine.high %v732_v44, %v2337_v48  ;;  %v737_v55 = vpack.i.b16 %v725_v43, %v691_v41  ;;  %v740_v56 = vshrl.u32 %v725_v43, 16  ;;  %v480_v61 = vpop.permute.xlu1 %479 }
 0x226   : > { %v747_v57 = vshrl.u32 %v699_v49, 16  ;;  %v763_v58 = vshrl.u32 %v700_v50, 16  ;;  %v753_v59 = vpack.i.b16 %v732_v44, %v698_v42  ;;  %v756_v60 = vshrl.u32 %v732_v44, 16 }
 0x227   : > { %v741_v62 = vpack.i.b16 %v740_v56, %v739_v51  ;;  %v745_v63 = vpack.i.b16 %v733_v53, %v699_v49  ;;  %v748_v1 = vshrl.u32 %v733_v53, 16  ;;  %v761_v2 = vpack.i.b16 %v734_v54, %v700_v50 }
 0x228   : > { %v757_v4 = vpack.i.b16 %v756_v60, %v755_v52  ;;  %v764_v5 = vshrl.u32 %v734_v54, 16  ;;  %v767_v6 = vcombine.low %v737_v55, %v753_v59  ;;  %v496_v7 = vcombine.low %v487_v45, %v495_v46 }
 0x229   : > { %v749_v8 = vpack.i.b16 %v748_v1, %v747_v57  ;;  %v775_v10 = vcombine.low %v745_v63, %v761_v2  ;;  %v497_v11 = vcombine.high %v487_v45, %v495_v46  ;;  %v529_v13 = vrot.slane %v480_v61, %v2581_v27 }
 0x22a   : > { %v765_v16 = vpack.i.b16 %v764_v5, %v763_v58  ;;  %v774_v17 = vrot.slane %v767_v6, %v2581_v27  ;;  %v792_v18 = vcombine.low %v741_v62, %v757_v4  ;;  %v504_v19 = vrot.slane %v496_v7, %v2583_v28 }
 0x22b   : > { %v782_v20 = vrot.slane %v775_v10, %v2581_v27  ;;  %v511_v21 = vrot.slane %v497_v11, %v2583_v28  ;;  %v530_v22 = vcombine.low %v521_v47, %v529_v13  ;;  %v531_v23 = vcombine.high %v521_v47, %v529_v13 }
 0x22c   : > { %v800_v24 = vcombine.low %v749_v8, %v765_v16  ;;  %v512_v25 = vcombine.high %v504_v19, %v2337_v48  ;;  %v799_v29 = vrot.slane %v792_v18, %v2581_v27  ;;  %v552_v33 = vshrl.u32 %v504_v19, 16 }
 0x22d   : > { %v783_v26 = vcombine.low %v774_v17, %v782_v20  ;;  %v513_v30 = vcombine.high %v511_v21, %v2337_v48  ;;  %v538_v31 = vrot.slane %v530_v22, %v2583_v28  ;;  %v568_v34 = vshrl.u32 %v511_v21, 16 }
 0x22e   : > { %v807_v32 = vrot.slane %v800_v24, %v2581_v27  ;;  %v545_v35 = vrot.slane %v531_v23, %v2583_v28  ;;  %v560_v37 = vshrl.u32 %v512_v25, 16 }
 0x22f   : > { %v790_v36 = vrot.slane %v783_v26, %v2583_v28  ;;  %v546_v38 = vcombine.high %v538_v31, %v2337_v48  ;;  %v550_v39 = vpack.i.b16 %v538_v31, %v504_v19  ;;  %v553_v42 = vshrl.u32 %v538_v31, 16 }
 0x230   : > { %v808_v40 = vcombine.low %v799_v29, %v807_v32  ;;  %v547_v41 = vcombine.high %v545_v35, %v2337_v48  ;;  %v566_v43 = vpack.i.b16 %v545_v35, %v511_v21  ;;  %v576_v45 = vshrl.u32 %v513_v30, 16 }
 0x231   : > { %v791_v44 = vcombine.high %v790_v36, %v2337_v48  ;;  %v558_v46 = vpack.i.b16 %v546_v38, %v512_v25  ;;  %v561_v47 = vshrl.u32 %v546_v38, 16  ;;  %v554_v50 = vpack.i.b16 %v553_v42, %v552_v33 }
 0x232   : > { %v815_v49 = vrot.slane %v808_v40, %v2583_v28  ;;  %v569_v51 = vshrl.u32 %v545_v35, 16  ;;  %v574_v52 = vpack.i.b16 %v547_v41, %v513_v30  ;;  %v821_v53 = vshrl.u32 %v790_v36, 16 }
 0x233   : > { %v562_v54 = vpack.i.b16 %v561_v47, %v560_v37  ;;  %v577_v55 = vshrl.u32 %v547_v41, 16  ;;  %v580_v56 = vcombine.low %v550_v39, %v566_v43  ;;  %v829_v61 = vshrl.u32 %v791_v44, 16 }
 0x234   : > { %v816_v57 = vcombine.high %v815_v49, %v2337_v48  ;;  %v819_v58 = vpack.i.b16 %v815_v49, %v790_v36  ;;  %v822_v59 = vshrl.u32 %v815_v49, 16  ;;  %v570_v60 = vpack.i.b16 %v569_v51, %v568_v34 }
 0x235   : > { %v578_v62 = vpack.i.b16 %v577_v55, %v576_v45  ;;  %v588_v63 = vcombine.low %v558_v46, %v574_v52  ;;  %v587_v6 = vrot.slane %v580_v56, %v2581_v27 }
 0x236   : > { %v823_v1 = vpack.i.b16 %v822_v59, %v821_v53  ;;  %v827_v2 = vpack.i.b16 %v816_v57, %v791_v44  ;;  %v830_v4 = vshrl.u32 %v816_v57, 16  ;;  %833 = vst.msk [vmem:[#allocation3] sm:$0xf] %vm646_vm2, %v819_v58  ;;  %v605_v5 = vcombine.low %v554_v50, %v570_v60  ;;  %v1891_v44 = vld [vmem:[%s353_s15] ss:$0 sm:$0xff]  ;;  %s397_s15 = scalar_lea.vmem [#allocation13], %s1883_s2 }
 0x237   : > { %v595_v7 = vrot.slane %v588_v63, %v2581_v27  ;;  %v613_v8 = vcombine.low %v562_v54, %v578_v62  ;;  %s1751_s11 = sshll.u32 %s397_s15, 4  ;;  %s1752_s11 = int_to_ptr.vmem [resolvable:$true] %s1751_s11 }
 0x238   : > { %v831_v10 = vpack.i.b16 %v830_v4, %v829_v61  ;;  %834 = vst.msk [vmem:[#allocation3 + $0x4] sm:$0xf] %vm646_vm2, %v823_v1  ;;  %835 = vst.msk [vmem:[#allocation3 + $0x8] sm:$0xf] %vm646_vm2, %v827_v2  ;;  %v612_v13 = vrot.slane %v605_v5, %v2581_v27  ;;  %s2229_s12 = scalar_lea.vmem %s1752_s11, 128 }
 0x239   : > { %v596_v11 = vcombine.low %v587_v6, %v595_v7  ;;  %v620_v16 = vrot.slane %v613_v8, %v2581_v27  ;;  %p2230_p4 = scmp.ne.s32.totalorder %s1752_s11, %s2229_s12 }
 0x23a   : > { %836 = vst.msk [vmem:[#allocation3 + $0xc] sm:$0xf] %vm646_vm2, %v831_v10 }
 0x23b   : > { %v603_v17 = vrot.slane %v596_v11, %v2583_v28  ;;  %v621_v18 = vcombine.low %v612_v13, %v620_v16  ;;  %p2231_p3 = pnand %p2230_p4, %p2479_p9 }
 0x23d   : > { %v604_v19 = vcombine.high %v603_v17, %v2337_v48  ;;  %v628_v20 = vrot.slane %v621_v18, %v2583_v28  ;;  %v1024_v21 = vld [vmem:[#allocation3] sm:$0xf]  ;;  %v634_v25 = vshrl.u32 %v603_v17, 16  ;;  %p2232_p7 = pneg %p2231_p3 }
 0x23e   : > { %v1040_v22 = vsel %vm1035_vm3, %v1024_v21, 0 }
 0x23f   : > { %v629_v23 = vcombine.high %v628_v20, %v2337_v48  ;;  %v632_v24 = vpack.i.b16 %v628_v20, %v603_v17  ;;  %v635_v26 = vshrl.u32 %v628_v20, 16  ;;  %1941 = vmatpush3.bf16.xpose.msra.mxu1 %v1040_v22  ;;  %v1025_v29 = vld [vmem:[#allocation3 + $0x4] sm:$0xf]  ;;  %v642_v33 = vshrl.u32 %v604_v19, 16  ;;  %v1026_v36 = vld [vmem:[#allocation3 + $0x8] sm:$0xf] }
 0x240   : > { %v1086_v30 = vsel %vm1035_vm3, %v1025_v29, 0  ;;  %1952 = vmatprep.subr.bf16.mxu1 %v2329_v0  ;;  %v1132_v39 = vsel %vm1035_vm3, %v1026_v36, 0 }
 0x241   : > { %v636_v31 = vpack.i.b16 %v635_v26, %v634_v25  ;;  %v640_v32 = vpack.i.b16 %v629_v23, %v604_v19  ;;  %v643_v34 = vshrl.u32 %v629_v23, 16  ;;  %647 = vst.msk [vmem:[#allocation2] sm:$0xf] %vm646_vm2, %v632_v24  ;;  %1947 = vmatpush3.bf16.xpose.msra.mxu0 %v1086_v30  ;;  %v1027_v38 = vld [vmem:[#allocation3 + $0xc] sm:$0xf] }
 0x242   : > { %1958 = vmatprep.subr.bf16.mxu0 %v2329_v0  ;;  %v1178_v41 = vsel %vm1035_vm3, %v1027_v38, 0 }
 0x243   : > { %v644_v35 = vpack.i.b16 %v643_v34, %v642_v33  ;;  %648 = vst.msk [vmem:[#allocation2 + $0x4] sm:$0xf] %vm646_vm2, %v636_v31  ;;  %649 = vst.msk [vmem:[#allocation2 + $0x8] sm:$0xf] %vm646_vm2, %v640_v32 }
 0x245   : > { %650 = vst.msk [vmem:[#allocation2 + $0xc] sm:$0xf] %vm646_vm2, %v644_v35 }
 0x248   : > { %v1020_v37 = vld [vmem:[#allocation2] sm:$0xf] }
 0x249   : > { %1943 = vmatmul.mubr.msk.bf16.vlgmr.msra.gmra.mxu1 %vm1035_vm3, %v1020_v37 }
 0x24a   : > { %1953 = vmatpush3.bf16.xpose.msra.mxu1 %v1132_v39  ;;  %v1021_v40 = vld [vmem:[#allocation2 + $0x4] sm:$0xf]  ;;  %1954 = vmatprep.mubr.msk.bf16.mxu1 %vm2330_vm0, %v2329_v0  ;;  %v1022_v42 = vld [vmem:[#allocation2 + $0x8] sm:$0xf] }
 0x24b   : > { %1949 = vmatmul.mubr.msk.bf16.vlgmr.msra.gmra.mxu0 %vm1035_vm3, %v1021_v40  ;;  %1964 = vmatprep.subr.bf16.mxu1 %v2329_v0 }
 0x24c   : > { %1959 = vmatpush3.bf16.xpose.msra.mxu0 %v1178_v41  ;;  %1960 = vmatprep.mubr.msk.bf16.mxu0 %vm2330_vm0, %v2329_v0  ;;  %v1023_v43 = vld [vmem:[#allocation2 + $0xc] sm:$0xf] }
 0x24d   : > { %1970 = vmatprep.subr.bf16.mxu0 %v2329_v0 }
 0x251   : > { %1955 = vmatmul.mubr.msk.bf16.vlgmr.msra.gmra.mxu1 %vm1035_vm3, %v1022_v42 }
 0x252   : > { %1966 = vmatprep.mubr.msk.bf16.mxu1 %vm2330_vm0, %v2329_v0 }
 0x253   : > { %1961 = vmatmul.mubr.msk.bf16.vlgmr.msra.gmra.mxu0 %vm1035_vm3, %v1023_v43 }
 0x254   : > { %1972 = vmatprep.mubr.msk.bf16.mxu0 %vm2330_vm0, %v2329_v0 }
 0x309   : > { %v1076_v45 = vpop.f32.mrf.mxu1 }
 0x30a   : > { %v1077_v46 = vadd.f32 %v1891_v44, %v1076_v45 }
 0x30b   : > { %v1944_v47 = vpop.f32.mrf.mxu1  ;;  %v1122_v49 = vpop.f32.mrf.mxu0 }
 0x30c   : > { %v1123_v50 = vadd.f32 %v1891_v44, %v1122_v49  ;;  %v1220_v51 = vsel %vm1035_vm3, %v1077_v46, -inf }
 0x30d   : > { %1221 = vmax.xlane.f32.xlu0 %v1220_v51  ;;  %v1079_v52 = vpop.f32.mrf.mxu1  ;;  %v1950_v53 = vpop.f32.mrf.mxu0 }
 0x30e   : > { %v1223_v54 = vsel %vm1035_vm3, %v1123_v50, -inf }
 0x30f   : > { %v1945_v55 = vpop.f32.mrf.mxu1  ;;  %1224 = vmax.xlane.f32.xlu1 %v1223_v54  ;;  %v1125_v56 = vpop.f32.mrf.mxu0 }
 0x311   : > { %v1951_v57 = vpop.f32.mrf.mxu0  ;;  %v1168_v58 = vpop.f32.mrf.mxu1 }
 0x312   : > { %v1169_v59 = vadd.f32 %v1891_v44, %v1168_v58 }
 0x313   : > { %v1956_v60 = vpop.f32.mrf.mxu1  ;;  %v1214_v61 = vpop.f32.mrf.mxu0 }
 0x314   : > { %v1215_v62 = vadd.f32 %v1891_v44, %v1214_v61  ;;  %v1226_v63 = vsel %vm1035_vm3, %v1169_v59, -inf }
 0x315   : > { %1227 = vmax.xlane.f32.xlu0 %v1226_v63  ;;  %v1171_v1 = vpop.f32.mrf.mxu1  ;;  %v1962_v2 = vpop.f32.mrf.mxu0 }
 0x316   : > { %v1229_v6 = vsel %vm1035_vm3, %v1215_v62, -inf }
 0x317   : > { %v1957_v4 = vpop.f32.mrf.mxu1  ;;  %v1217_v5 = vpop.f32.mrf.mxu0 }
 0x319   : > { %1230 = vmax.xlane.f32.xlu0 %v1229_v6  ;;  %v1963_v7 = vpop.f32.mrf.mxu0 }
 0x320   : > { %837 = vrot.lane.b32.xlu1 %v2566_v9, %s2338_s21 }
 0x324   : > { %841 = vrot.lane.b32.xlu1 %v2577_v15, %s2338_s21 }
 0x328   : > { %843 = vrot.lane.b32.xlu1 %v2575_v14, %s2338_s21 }
 0x32f   : > { %839 = vrot.lane.b32.xlu0 %v2572_v12, %s2338_s21  ;;  %s2342_s21 = smov [#allocation13]  }
 0x330   : > { %s2233_s30 = sshll.u32 %s2342_s21, 4  ;;  %s2234_s30 = int_to_ptr.vmem [resolvable:$false] %s2233_s30 }
 0x331   : > { %s2235_s2 = scalar_lea.vmem %s2234_s30, 256  ;;  %p2236_p11 = scmp.lt.s32.totalorder %s1752_s11, %s2234_s30 }
 0x332   : > { %p2237_p5 = scmp.lt.s32.totalorder %s2235_s2, %s2229_s12 }
 0x334   : > { %p2238_p10 = por %p2237_p5, %p2236_p11 }
 0x336   : > { %p2239_p1 = pnand %p2238_p10, %p2232_p7 }
 0x396   : > { %v1222_v8 = vpop.xlane.xlu0 %1221 }
 0x397   : > { %v1232_v10 = vsub.f32 %v1077_v46, %v1222_v8 }
 0x398   : > { %v1225_v11 = vpop.xlane.xlu1 %1224 }
 0x399   : > { %v1236_v13 = vmul.f32 1.442695, %v1232_v10  ;;  %v1233_v16 = vsub.f32 %v1123_v50, %v1225_v11 }
 0x39b   : > { %2103 = vpow2.f32 %v1236_v13  ;;  %v1238_v17 = vmul.f32 1.442695, %v1233_v16 }
 0x39c   : > { %v838_v18 = vpop.permute.xlu1 %837 }
 0x39d   : > { %2105 = vpow2.f32 %v1238_v17  ;;  %v852_v9 = vrot.slane %v838_v18, %v2581_v27 }
 0x39e   : > { %v1228_v19 = vpop.xlane.xlu0 %1227 }
 0x39f   : > { %v1234_v20 = vsub.f32 %v1169_v59, %v1228_v19 }
 0x3a0   : > { %v842_v21 = vpop.permute.xlu1 %841 }
 0x3a1   : > { %v1240_v22 = vmul.f32 1.442695, %v1234_v20  ;;  %v860_v15 = vrot.slane %v842_v21, %v2581_v27 }
 0x3a2   : > { %v1231_v14 = vpop.xlane.xlu0 %1230 }
 0x3a3   : > { %2107 = vpow2.f32 %v1240_v22  ;;  %v861_v12 = vcombine.low %v852_v9, %v860_v15  ;;  %v862_v23 = vcombine.high %v852_v9, %v860_v15  ;;  %v1235_v24 = vsub.f32 %v1215_v62, %v1231_v14 }
 0x3a4   : > { %v844_v26 = vpop.permute.xlu1 %843 }
 0x3a5   : > { %v1242_v25 = vmul.f32 1.442695, %v1235_v24  ;;  %v869_v30 = vrot.slane %v861_v12, %v2583_v28  ;;  %v876_v31 = vrot.slane %v862_v23, %v2583_v28  ;;  %v894_v33 = vrot.slane %v844_v26, %v2581_v27 }
 0x3a6   : > { %v840_v29 = vpop.permute.xlu0 %839 }
 0x3a7   : > { %2109 = vpow2.f32 %v1242_v25  ;;  %v886_v34 = vrot.slane %v840_v29, %v2581_v27  ;;  %v877_v39 = vcombine.high %v869_v30, %v2337_v48  ;;  %v878_v40 = vcombine.high %v876_v31, %v2337_v48 }
 0x3a8   : > { %v2667_v32 = vpop.eup %2103  ;;  %v917_v44 = vshrl.u32 %v869_v30, 16  ;;  %v933_v45 = vshrl.u32 %v876_v31, 16 }
 0x3a9   : > { %v1244_v35 = vsel %vm1035_vm3, %v2667_v32, 0.0  ;;  %v895_v37 = vcombine.low %v886_v34, %v894_v33  ;;  %v896_v38 = vcombine.high %v886_v34, %v894_v33  ;;  %v925_v51 = vshrl.u32 %v877_v39, 16 }
 0x3aa   : > { %v2673_v36 = vpop.eup %2105  ;;  %1245 = vadd.xlane.f32.xlu0 %v1244_v35  ;;  %v941_v52 = vshrl.u32 %v878_v40, 16 }
 0x3ab   : > { %v1247_v41 = vsel %vm1035_vm3, %v2673_v36, 0.0  ;;  %v903_v42 = vrot.slane %v895_v37, %v2583_v28  ;;  %v910_v43 = vrot.slane %v896_v38, %v2583_v28 }
 0x3ac   : > { %1248 = vadd.xlane.f32.xlu1 %v1247_v41 }
 0x3ad   : > { %v911_v46 = vcombine.high %v903_v42, %v2337_v48  ;;  %v912_v47 = vcombine.high %v910_v43, %v2337_v48  ;;  %v915_v49 = vpack.i.b16 %v903_v42, %v869_v30  ;;  %v918_v50 = vshrl.u32 %v903_v42, 16 }
 0x3ae   : > { %v931_v53 = vpack.i.b16 %v910_v43, %v876_v31  ;;  %v934_v54 = vshrl.u32 %v910_v43, 16 }
 0x3af   : > { %v919_v56 = vpack.i.b16 %v918_v50, %v917_v44  ;;  %v923_v57 = vpack.i.b16 %v911_v46, %v877_v39  ;;  %v926_v58 = vshrl.u32 %v911_v46, 16  ;;  %v939_v59 = vpack.i.b16 %v912_v47, %v878_v40 }
 0x3b0   : > { %v2683_v55 = vpop.eup %2107  ;;  %v935_v60 = vpack.i.b16 %v934_v54, %v933_v45  ;;  %v942_v61 = vshrl.u32 %v912_v47, 16  ;;  %v945_v62 = vcombine.low %v915_v49, %v931_v53  ;;  %v2101_v54 = vld [vmem:[#allocation11 + $0x8] sm:$0xff]  }
 0x3b1   : > { %v1250_v63 = vsel %vm1035_vm3, %v2683_v55, 0.0  ;;  %v927_v1 = vpack.i.b16 %v926_v58, %v925_v51  ;;  %v953_v2 = vcombine.low %v923_v57, %v939_v59 }
 0x3b2   : > { %1251 = vadd.xlane.f32.xlu0 %v1250_v63  ;;  %v943_v4 = vpack.i.b16 %v942_v61, %v941_v52  ;;  %v970_v5 = vcombine.low %v919_v56, %v935_v60  ;;  %v952_v6 = vrot.slane %v945_v62, %v2581_v27 }
 0x3b3   : > { %v960_v7 = vrot.slane %v953_v2, %v2581_v27 }
 0x3b4   : > { %v2689_v8 = vpop.eup %2109  ;;  %v978_v10 = vcombine.low %v927_v1, %v943_v4  ;;  %v977_v16 = vrot.slane %v970_v5, %v2581_v27 }
 0x3b5   : > { %v961_v11 = vcombine.low %v952_v6, %v960_v7  ;;  %v1253_v13 = vsel %vm1035_vm3, %v2689_v8, 0.0 }
 0x3b6   : > { %v985_v17 = vrot.slane %v978_v10, %v2581_v27  ;;  %1254 = vadd.xlane.f32.xlu0 %v1253_v13 }
 0x3b7   : > { %v968_v18 = vrot.slane %v961_v11, %v2583_v28 }
 0x3b8   : > { %v986_v19 = vcombine.low %v977_v16, %v985_v17 }
 0x3b9   : > { %v969_v20 = vcombine.high %v968_v18, %v2337_v48  ;;  %v999_v15 = vshrl.u32 %v968_v18, 16 }
 0x3ba   : > { %v993_v21 = vrot.slane %v986_v19, %v2583_v28 }
 0x3bb   : > { %v1007_v24 = vshrl.u32 %v969_v20, 16 }
 0x3bc   : > { %v994_v9 = vcombine.high %v993_v21, %v2337_v48  ;;  %v997_v22 = vpack.i.b16 %v993_v21, %v968_v18  ;;  %v1000_v14 = vshrl.u32 %v993_v21, 16 }
 0x3be   : > { %v1001_v12 = vpack.i.b16 %v1000_v14, %v999_v15  ;;  %v1005_v23 = vpack.i.b16 %v994_v9, %v969_v20  ;;  %v1008_v25 = vshrl.u32 %v994_v9, 16  ;;  %1011 = vst.msk [vmem:[#allocation4] sm:$0xf] %vm646_vm2, %v997_v22 }
 0x3c0   : > { %v1009_v26 = vpack.i.b16 %v1008_v25, %v1007_v24  ;;  %1012 = vst.msk [vmem:[#allocation4 + $0x4] sm:$0xf] %vm646_vm2, %v1001_v12  ;;  %1013 = vst.msk [vmem:[#allocation4 + $0x8] sm:$0xf] %vm646_vm2, %v1005_v23 }
 0x3c2   : > { %1014 = vst.msk [vmem:[#allocation4 + $0xc] sm:$0xf] %vm646_vm2, %v1009_v26 }
 0x3c5   : > { %v1268_v29 = vld [vmem:[#allocation4] sm:$0xf] }
 0x3c6   : > { %v1277_v30 = vsel %vm1275_vm4, %v1268_v29, 0 }
 0x3c7   : > { %1965 = vmatpush3.bf16.msra.mxu1 %v1277_v30  ;;  %v1269_v31 = vld [vmem:[#allocation4 + $0x4] sm:$0xf]  ;;  %v1270_v42 = vld [vmem:[#allocation4 + $0x8] sm:$0xf] }
 0x3c8   : > { %v1323_v33 = vsel %vm1275_vm4, %v1269_v31, 0  ;;  %1976 = vmatprep.subr.bf16.mxu1 %v2329_v0  ;;  %v1369_v46 = vsel %vm1275_vm4, %v1270_v42, 0 }
 0x3c9   : > { %1971 = vmatpush3.bf16.msra.mxu0 %v1323_v33  ;;  %v1271_v45 = vld [vmem:[#allocation4 + $0xc] sm:$0xf] }
 0x3ca   : > { %1982 = vmatprep.subr.bf16.mxu0 %v2329_v0  ;;  %v1415_v49 = vsel %vm1275_vm4, %v1271_v45, 0 }
 0x433   : > { %v1246_v34 = vpop.xlane.xlu0 %1245 }
 0x434   : > { %2111 = vrcp.f32 %v1246_v34 }
 0x435   : > { %v1249_v35 = vpop.xlane.xlu1 %1248 }
 0x436   : > { %2113 = vrcp.f32 %v1249_v35 }
 0x43b   : > { %v1252_v37 = vpop.xlane.xlu0 %1251 }
 0x43c   : > { %2115 = vrcp.f32 %v1252_v37 }
 0x43f   : > { %v1255_v38 = vpop.xlane.xlu0 %1254 }
 0x440   : > { %2117 = vrcp.f32 %v1255_v38 }
 0x441   : > { %v2112_v39 = vpop.eup %2111 }
 0x442   : > { %v1260_v40 = vmul.f32 %v2112_v39, %v2667_v32 }
 0x443   : > { %v2114_v41 = vpop.eup %2113 }
 0x444   : > { %v1264_v43 = vpack.c.bf16 %v1260_v40, %v1260_v40  ;;  %v1261_v44 = vmul.f32 %v2114_v41, %v2673_v36 }
 0x446   : > { %1967 = vmatmul.mubr.msk.bf16.vlgmr.msra.gmra.mxu1 %vm1035_vm3, %v1264_v43  ;;  %v1265_v47 = vpack.c.bf16 %v1261_v44, %v1261_v44 }
 0x447   : > { %1977 = vmatpush3.bf16.msra.mxu1 %v1369_v46  ;;  %1978 = vmatprep.mubr.msk.bf16.mxu1 %vm2330_vm0, %v2329_v0 }
 0x448   : > { %1973 = vmatmul.mubr.msk.bf16.vlgmr.msra.gmra.mxu0 %vm1035_vm3, %v1265_v47  ;;  %1988 = vmatprep.subr.bf16.mxu1 %v2329_v0 }
 0x449   : > { %v2116_v32 = vpop.eup %2115  ;;  %1983 = vmatpush3.bf16.msra.mxu0 %v1415_v49  ;;  %1984 = vmatprep.mubr.msk.bf16.mxu0 %vm2330_vm0, %v2329_v0 }
 0x44a   : > { %v1262_v36 = vmul.f32 %v2116_v32, %v2683_v55 }
 0x44c   : > { %v1266_v50 = vpack.c.bf16 %v1262_v36, %v1262_v36 }
 0x44d   : > { %v2118_v51 = vpop.eup %2117 }
 0x44e   : > { %1979 = vmatmul.mubr.msk.bf16.vlgmr.msra.gmra.mxu1 %vm1035_vm3, %v1266_v50  ;;  %v1263_v52 = vmul.f32 %v2118_v51, %v2689_v8 }
 0x44f   : > { %1992 = vmatprep.mubr.msk.bf16.mxu1 %vm2330_vm0, %v2329_v0  ;;  %1989 = vmatpush3.bf16.msra.mxu1 %v2101_v54 }
 0x450   : > { %v1267_v53 = vpack.c.bf16 %v1263_v52, %v1263_v52  ;;  %1990 = vmatprep.subr.bf16.mxu1 %v2329_v0  ;;  %v2102_v52 = vld [vmem:[#allocation11] sm:$0xff]  }
 0x452   : > { %1985 = vmatmul.mubr.msk.bf16.vlgmr.msra.gmra.mxu0 %vm1035_vm3, %v1267_v53 }
 0x453   : > { %1991 = vmatpush3.bf16.msra.mxu1 %v2102_v52 }
 0x506   : > { %v1313_v56 = vpop.f32.mrf.mxu1 }
 0x507   : > { %v1457_v62 = vpack.c.bf16 %v1313_v56, %v1313_v56 }
 0x508   : > { %v1968_v57 = vpop.f32.mrf.mxu1  ;;  %v1359_v58 = vpop.f32.mrf.mxu0 }
 0x509   : > { %v1464_v5 = vrot.slane %v1457_v62, %v2581_v27  ;;  %v1491_v7 = vpack.c.bf16 %v1359_v58, %v1359_v58 }
 0x50a   : > { %v1316_v55 = vpop.f32.mrf.mxu1  ;;  %v1974_v59 = vpop.f32.mrf.mxu0 }
 0x50b   : > { %v1498_v19 = vrot.slane %v1491_v7, %v2581_v27 }
 0x50c   : > { %v1969_v60 = vpop.f32.mrf.mxu1  ;;  %v1362_v61 = vpop.f32.mrf.mxu0 }
 0x50e   : > { %v1975_v63 = vpop.f32.mrf.mxu0  ;;  %v1405_v1 = vpop.f32.mrf.mxu1 }
 0x50f   : > { %v1465_v2 = vpack.c.bf16 %v1405_v1, %v1405_v1 }
 0x510   : > { %v1980_v4 = vpop.f32.mrf.mxu1 }
 0x511   : > { %v1472_v6 = vrot.slane %v1465_v2, %v2581_v27 }
 0x512   : > { %v1408_v8 = vpop.f32.mrf.mxu1  ;;  %v1451_v11 = vpop.f32.mrf.mxu0 }
 0x513   : > { %v1473_v10 = vcombine.low %v1464_v5, %v1472_v6  ;;  %v1474_v0 = vcombine.high %v1464_v5, %v1472_v6  ;;  %v1499_v13 = vpack.c.bf16 %v1451_v11, %v1451_v11  ;;  %v1900_v11 = vld [vmem:[%s2807_s5] ss:$0 sm:$0xff] }
 0x514   : > { %v1981_v16 = vpop.f32.mrf.mxu1  ;;  %v1986_v18 = vpop.f32.mrf.mxu0 }
 0x515   : > { %v1481_v17 = vrot.slane %v1473_v10, %v2583_v28  ;;  %v1506_v20 = vrot.slane %v1499_v13, %v2581_v27  ;;  %v1488_v21 = vrot.slane %v1474_v0, %v2583_v28 }
 0x516   : > { %v1454_v9 = vpop.f32.mrf.mxu0 }
 0x517   : > { %v1507_v22 = vcombine.low %v1498_v19, %v1506_v20  ;;  %v1508_v15 = vcombine.high %v1498_v19, %v1506_v20  ;;  %v1489_v14 = vcombine.high %v1481_v17, %v2337_v48  ;;  %v1490_v25 = vcombine.high %v1488_v21, %v2337_v48 }
 0x518   : > { %v1987_v12 = vpop.f32.mrf.mxu0  ;;  %v1529_v26 = vshrl.u32 %v1481_v17, 16  ;;  %v1545_v35 = vshrl.u32 %v1488_v21, 16 }
 0x519   : > { %v1515_v23 = vrot.slane %v1507_v22, %v2583_v28  ;;  %v1522_v24 = vrot.slane %v1508_v15, %v2583_v28  ;;  %v1537_v34 = vshrl.u32 %v1489_v14, 16  ;;  %v1553_v43 = vshrl.u32 %v1490_v25, 16 }
 0x51b   : > { %v1523_v29 = vcombine.high %v1515_v23, %v2337_v48  ;;  %v1524_v30 = vcombine.high %v1522_v24, %v2337_v48  ;;  %v1527_v31 = vpack.i.b16 %v1515_v23, %v1481_v17  ;;  %v1530_v33 = vshrl.u32 %v1515_v23, 16 }
 0x51c   : > { %v1543_v37 = vpack.i.b16 %v1522_v24, %v1488_v21  ;;  %v1546_v38 = vshrl.u32 %v1522_v24, 16 }
 0x51d   : > { %v1531_v39 = vpack.i.b16 %v1530_v33, %v1529_v26  ;;  %v1535_v40 = vpack.i.b16 %v1523_v29, %v1489_v14  ;;  %v1538_v41 = vshrl.u32 %v1523_v29, 16  ;;  %v1551_v42 = vpack.i.b16 %v1524_v30, %v1490_v25  ;;  %v1905_v33 = vld [vmem:[%s2809_s7] ss:$0 sm:$0xff] }
 0x51e   : > { %v1547_v44 = vpack.i.b16 %v1546_v38, %v1545_v35  ;;  %v1554_v45 = vshrl.u32 %v1524_v30, 16  ;;  %v1557_v46 = vcombine.low %v1527_v31, %v1543_v37  ;;  %v1904_v30 = vld [vmem:[%s2808_s6] ss:$0 sm:$0xff] }
 0x51f   : > { %v1539_v47 = vpack.i.b16 %v1538_v41, %v1537_v34  ;;  %v1565_v49 = vcombine.low %v1535_v40, %v1551_v42 }
 0x520   : > { %v1555_v32 = vpack.i.b16 %v1554_v45, %v1553_v43  ;;  %v1582_v36 = vcombine.low %v1531_v39, %v1547_v44  ;;  %v1564_v50 = vrot.slane %v1557_v46, %v2581_v27 }
 0x521   : > { %v1572_v51 = vrot.slane %v1565_v49, %v2581_v27 }
 0x522   : > { %v1590_v53 = vcombine.low %v1539_v47, %v1555_v32  ;;  %v1589_v56 = vrot.slane %v1582_v36, %v2581_v27 }
 0x523   : > { %v1573_v54 = vcombine.low %v1564_v50, %v1572_v51 }
 0x524   : > { %v1597_v57 = vrot.slane %v1590_v53, %v2581_v27 }
 0x525   : > { %v1580_v58 = vrot.slane %v1573_v54, %v2583_v28 }
 0x526   : > { %v1598_v55 = vcombine.low %v1589_v56, %v1597_v57 }
 0x527   : > { %v1610_v60 = vshrl.u32 %v1580_v58, 16  ;;  %v1581_v62 = vcombine.high %v1580_v58, %v2337_v48 }
 0x528   : > { %v1605_v59 = vrot.slane %v1598_v55, %v2583_v28 }
 0x529   : > { %v1616_v27 = vshrl.u32 %v1581_v62, 16 }
 0x52a   : > { %v1611_v61 = vshrl.u32 %v1605_v59, 16  ;;  %v1606_v63 = vcombine.high %v1605_v59, %v2337_v48  ;;  %v1609_v1 = vpack.i.b16 %v1605_v59, %v1580_v58 }
 0x52c   : > { %v1612_v2 = vpack.i.b16 %v1611_v61, %v1610_v60  ;;  %v1615_v4 = vpack.i.b16 %v1606_v63, %v1581_v62  ;;  %v1617_v5 = vshrl.u32 %v1606_v63, 16 }
 0x52e   : > { %1619 = vrot.lane.b32.xlu1 %v1612_v2, %s2339_s26  ;;  %1621 = vrot.lane.b32.xlu0 %v1615_v4, %s2340_s16  ;;  %v1618_v6 = vpack.i.b16 %v1617_v5, %v1616_v27 }
 0x532   : > { %1623 = vrot.lane.b32.xlu1 %v1618_v6, %s2341_s20 }
 0x5a0   : > { %v1620_v7 = vpop.permute.xlu1 %1619  ;;  %v1622_v8 = vpop.permute.xlu0 %1621 }
 0x5a1   : > { %v1627_v28 = vsel %vm1035_vm3, %v1609_v1, %v1620_v7 }
 0x5a2   : > { %v1630_v10 = vsel %vm1628_vm5, %v1627_v28, %v1622_v8 }
 0x5a4   : > { %v1624_v48 = vpop.permute.xlu1 %1623 }
 0x5a5   : > { %v1633_v0 = vsel %vm1631_vm6, %v1630_v10, %v1624_v48 }
 0x5a6   : > { %1993 = vmatmul.mubr.msk.bf16.vlgmr.msra.gmra.mxu1 %vm428_vm1, %v1633_v0 }
 0x666   : > { %v1694_v13 = vpop.f32.mrf.mxu1 }
 0x667   : > { %v1695_v16 = vadd.f32 %v1900_v11, %v1694_v13 }
 0x668   : > { %v1994_v17 = vpop.f32.mrf.mxu1 }
 0x669   : > { %v1702_v18 = vadd.f32 %v1695_v16, %v2554_v3 }
 0x66a   : > { %v1697_v19 = vpop.f32.mrf.mxu1 }
 0x66b   : > { %v1703_v20 = vsel %vm428_vm1, %v1702_v18, 0.0  ;;  %v1708_v21 = vmul.f32 %v1702_v18, %v1702_v18 }
 0x66c   : > { %1704 = vadd.xlane.f32.xlu1 %v1703_v20  ;;  %v1995_v9 = vpop.f32.mrf.mxu1 }
 0x66d   : > { %v1709_v22 = vsel %vm428_vm1, %v1708_v21, 0.0 }
 0x66e   : > { %1710 = vadd.xlane.f32.xlu0 %v1709_v22 }
 0x6f5   : > { %v1705_v15 = vpop.xlane.xlu1 %1704 }
 0x6f6   : > { %v1707_v14 = vmul.f32 0.03125, %v1705_v15 }
 0x6f7   : > { %v1711_v12 = vpop.xlane.xlu0 %1710 }
 0x6f8   : > { %v1713_v23 = vmul.f32 %v1707_v14, %v1707_v14  ;;  %v1712_v24 = vmul.f32 0.03125, %v1711_v12  ;;  %v1715_v3 = vsub.f32 %v1702_v18, %v1707_v14 }
 0x6fa   : > { %v1714_v25 = vsub.f32 %v1712_v24, %v1713_v23 }
 0x6fc   : > { %v1716_v26 = vadd.f32 1e-12, %v1714_v25 }
 0x6fe   : > { %2119 = vrsqrt.f32 %v1716_v26 }
 0x70b   : > { %v2120_v29 = vpop.eup %2119 }
 0x70c   : > { %v1718_v31 = vmul.f32 %v2120_v29, %v1715_v3 }
 0x70e   : > { %v1726_v34 = vmul.f32 %v1904_v30, %v1718_v31 }
 0x710   : > { %v1734_v35 = vadd.f32 %v1905_v33, %v1726_v34 }
 0x712   : > { %1735 = vst.msk [vmem:[%s397_s15] sm:$0xff] %vm428_vm1, %v1734_v35 }
 0x713   : > { %2242 = shalt.err (!%p2239_p1)
}
 0x714   : > { %s2243_s26 = scalar_lea.hbm %s1749_s24, 128  ;;  %s2247_s20 = scalar_lea.hbm %s2810_s8, 256 }
 0x715   : > { %p2244_p2 = scmp.ne.s32.totalorder %s1749_s24, %s2243_s26  ;;  %p2248_p13 = scmp.lt.s32.totalorder %s1749_s24, %s2810_s8 }
 0x716   : > { %p2249_p0 = scmp.lt.s32.totalorder %s2247_s20, %s2243_s26 }
 0x717   : > { %p2245_p6 = pnand %p2244_p2, %p2479_p9 }
 0x718   : > { %p2250_p12 = por %p2249_p0, %p2248_p13 }
 0x719   : > { %p2246_p8 = pneg %p2245_p6 }
 0x71b   : > { %p2251_p4 = pnand %p2250_p12, %p2246_p8 }
 0x71d   : > { %2254 = shalt.err (!%p2251_p4)
}
 0x71e   : > { %2008 = dma.vmem_to_hbm [thread:$0]  (%p2479_p9), %s1752_s11, 128, %s1749_s24, %s1737_s23  }
 0x71f PF: > { %s2839_s25 = sld [smem:[#allocation21_spill]]  ;;  %s1763_s14 = sand.u32 1, %s2301_s27  }
 0x720   : > { %s2840_s29 = sld [smem:[#allocation20_spill]]  ;;  %s1764_s4 = scalar_lea.sflag [#allocation7], %s1763_s14 }
 0x725   : > { %p2841_p3 = scmp.ne.s32.totalorder %s2839_s25, 0 }
 0x726   : > { %p2842_p7 = scmp.ge.s32.totalorder %s2840_s29, 2 }
 0x728   : > { %p2025_p11 = pnand %p2842_p7, %p2841_p3 }
 0x72a   : > { %p2026_p5 = pneg %p2025_p11 }
 0x72c   : > { %2296 = dma.done.wait (%p2026_p5), %s1764_s4, 128  }
 0x72d   : > { %2298 = vsyncadd (%p2026_p5), %s1764_s4, 4294967168  ;;  %s28_s10 = sadd.s32 1, %s2840_s29   ;;  %s2843_s15 = sld [smem:[#allocation19_spill]] }
 0x72e   : > { %p25_p10 = scmp.ge.s32.totalorder %s28_s10, 4   ;;  %s2844_s29 = sld [smem:[#allocation23_spill]] }
 0x72f   : > { %s2845_s18 = sld [smem:[#allocation22_spill]]  ;;  %s2846_s27 = smov %s2305_s28 }
 0x730   : > { %s2848_s30 = smov %s2317_s9 }
 0x731   :  { %27 = sbr.rel (!%p25_p10) target bundleno = 13 (0xd), region = 124 }
 0x733   : > { %s2847_s28 = smov %s2843_s15 }
 0x735   : > { %s2849_s9 = smov %s2845_s18 }
 0x736   :  { %1769 = vsyncpa [#allocation6], 1 }
 0x737   :  { %1771 = vsyncpa [#allocation6 + $0x1], 1 }
 0x738   :  { %1772 = vsyncpa [#allocation9], 1 }
 0x739   :  { %1774 = vsyncpa [#allocation9 + $0x1], 1 }
 0x73a   :  { %1775 = vsyncpa [#allocation12], 1 }
 0x73b   :  { %1776 = vsyncpa [#allocation7], 1 }
 0x73c   :  { %1778 = vsyncpa [#allocation7 + $0x1], 1 }

</bundles_post_ra>
